<compile_context>
chip_gen: v5e
topology: v5e:2x2
jax: 0.10.0
libtpu: 0.0.40
codegen_flags: <defaults>
</compile_context>

<pallas_src>
import functools

import jax
import jax.numpy as jnp
from jax.experimental import pallas as pl
from jax.experimental.pallas import tpu as pltpu

NUM_AUX_TARGETS = 6                      # output dim = num_aux_targets + 1
D_IN, D_H1, D_H2 = 4, 32, 16
D_OUT = NUM_AUX_TARGETS + 1


def _mlp_kernel(x_ref, w1_ref, b1_ref, w2_ref, w3_ref, o_ref):
    """One batch tile, feature-major: x_ref (D_IN, TN) -> o_ref (D_OUT, TN).

    All three layers run on the MXU (f32 accumulation).  w1/b1 are augmented
    with one extra row so h1 carries a constant ones row through the ReLU;
    that row folds the layer-2/3 biases into their contractions, leaving the
    fused layer-1 bias add as the only VALU bias pass.
    """
    x = x_ref[...].astype(jnp.float32)                                  # (4, TN)

    # Layer 1 (+ carried ones row) on the MXU: (D_H1+1, TN).
    h1 = jnp.dot(w1_ref[...], x, preferred_element_type=jnp.float32)
    h1 = jnp.maximum(h1 + b1_ref[...], 0.0)        # row D_H1 = relu(0 + 1) = 1

    # Layer 2, bias folded via the ones row: (D_H2+1, TN); row D_H2 stays 1.
    h2 = jnp.maximum(
        jnp.dot(w2_ref[...], h1, preferred_element_type=jnp.float32), 0.0)

    # Layer 3, bias folded: (D_OUT, TN).  Lane-dense store.
    out = jnp.dot(w3_ref[...], h2, preferred_element_type=jnp.float32)
    o_ref[...] = out.astype(o_ref.dtype)


def _augment_params(w1, b1, w2, b2, w3, b3):
    """PyTorch-layout params -> bias-folded kernel params (tiny, wrapper-side).

    w*: [out, in], b*: [out] or [out, 1].
      w1a: (D_H1+1, D_IN)    rows 0..31 = w1, row 32 = 0
      b1a: (D_H1+1, 1)       rows 0..31 = b1, row 32 = 1   (ones-row source)
      w2a: (D_H2+1, D_H1+1)  [[w2, b2], [0...0, 1]]
      w3a: (D_OUT, D_H2+1)   [w3, b3]
    """
    f32 = jnp.float32
    w1 = jnp.asarray(w1, f32)
    w2 = jnp.asarray(w2, f32)
    w3 = jnp.asarray(w3, f32)
    b1 = jnp.asarray(b1, f32).reshape(D_H1, 1)
    b2 = jnp.asarray(b2, f32).reshape(D_H2, 1)
    b3 = jnp.asarray(b3, f32).reshape(D_OUT, 1)

    w1a = jnp.concatenate([w1, jnp.zeros((1, D_IN), f32)], axis=0)
    b1a = jnp.concatenate([b1, jnp.ones((1, 1), f32)], axis=0)
    ones_row = jnp.concatenate(
        [jnp.zeros((1, D_H1), f32), jnp.ones((1, 1), f32)], axis=1)
    w2a = jnp.concatenate([jnp.concatenate([w2, b2], axis=1), ones_row], axis=0)
    w3a = jnp.concatenate([w3, b3], axis=1)
    return w1a, b1a, w2a, w3a


def _round_up(x, m):
    return ((x + m - 1) // m) * m


def _choose_tile_n(n, tile_n):
    """Static (trace-time) batch-tile choice.

    - multiple of 128 (lane-dense loads/stores), capped at the padded batch;
    - >= 2 grid steps where possible, with an EVEN step count for small grids
      so v7x's two TensorCores split the "parallel" batch axis evenly;
    - otherwise as large as requested: fewer steps amortize the ~0.35us/step
      overhead, and per-tile VMEM (~0.25 MiB at tile_n=2048) is never the
      constraint on any generation (v7x included).
    """
    n_up = _round_up(max(n, 1), 128)
    tile_n = max(128, min((tile_n // 128) * 128, n_up))
    steps = -(-n // tile_n)
    if steps == 1 and n_up >= 256:
        # Split a single tile in two so v7x's second TensorCore has work.
        tile_n = _round_up(-(-n_up // 2), 128)
    elif 1 < steps <= 8 and steps % 2 == 1:
        # Small odd grid: one v7x core would idle for up to 1/steps of the time.
        t = tile_n
        while t > 128 and (-(-n // t)) % 2 == 1:
            t -= 128
        if (-(-n // t)) % 2 == 0:
            tile_n = t
    return tile_n


@functools.partial(jax.jit, static_argnames=("tile_n", "out_dtype"))
def mlp_forward_fm(x_fm, w1, b1, w2, b2, w3, b3, *, tile_n=2048,
                   out_dtype=jnp.float32):
    """Feature-major MLP head (production entry point).

    x_fm: [D_IN, N], any float dtype.  Passing bf16 halves the x HBM read
          (worth it on v6e/v7x; keep f32 on v5e) -- all in-kernel math is f32.
    Weights are PyTorch layout: w* [out, in], b* [out] (or [out, 1]).
    Returns [D_OUT, N] in out_dtype (bf16 output quantizes results).

    No transposes, no pad/slice: the batch maps straight onto the lane axis
    and the ragged last tile is handled by Pallas' clamped boundary DMAs.
    tile_n is a sweepable hint (2048 default; 8192-16384 for huge batches).
    """
    d_in, n = x_fm.shape
    if d_in != D_IN:
        raise ValueError(f"expected x_fm of shape ({D_IN}, N), got {x_fm.shape}")

    w1a, b1a, w2a, w3a = _augment_params(w1, b1, w2, b2, w3, b3)
    tn = _choose_tile_n(n, tile_n)
    grid = (pl.cdiv(n, tn),)

    rep = lambda shape: pl.BlockSpec(shape, lambda i: (0, 0))   # tiny resident operands

    return pl.pallas_call(
        _mlp_kernel,
        out_shape=jax.ShapeDtypeStruct((D_OUT, n), out_dtype),
        grid_spec=pltpu.PrefetchScalarGridSpec(
            num_scalar_prefetch=0,
            grid=grid,
            in_specs=[
                pl.BlockSpec((D_IN, tn), lambda i: (0, i)),     # x batch tile (lane-dense)
                rep((D_H1 + 1, D_IN)),                          # w1a (33, 4)
                rep((D_H1 + 1, 1)),                             # b1a (33, 1)
                rep((D_H2 + 1, D_H1 + 1)),                      # w2a (17, 33)
                rep((D_OUT, D_H2 + 1)),                         # w3a (7, 17)
            ],
            out_specs=pl.BlockSpec((D_OUT, tn), lambda i: (0, i)),
        ),
        compiler_params=pltpu.CompilerParams(
            dimension_semantics=("parallel",),                  # v7x: 2 TCs share the grid
        ),
    )(x_fm, w1a, b1a, w2a, w3a)


@functools.partial(jax.jit, static_argnames=("tile_n", "out_dtype"))
def mlp_forward(x, w1, b1, w2, b2, w3, b3, *, tile_n=2048, out_dtype=jnp.float32):
    """PyTorch-parity entry point: x [N, D_IN] -> [N, D_OUT].

    NOTE: the two transposes here each cost a full HBM round-trip of x / the
    output (more traffic than the kernel itself).  Prefer `mlp_forward_fm`
    and keep the surrounding graph feature-major.
    # TODO(synk): if batch-major is mandatory end-to-end, DMA the contiguous
    # [N,4] f32 buffer as a lane-dense [N/32,128] slab and de-interleave
    # on-chip (strided selects / pltpu.roll on the idle XLU) instead.
    """
    out_fm = mlp_forward_fm(x.T, w1, b1, w2, b2, w3, b3,
                            tile_n=tile_n, out_dtype=out_dtype)
    return out_fm.T


def _init_linear(key, fan_in, fan_out):
    """Deterministic nn.Linear-style U(-1/sqrt(fan_in), +1/sqrt(fan_in)) init."""
    kw, kb = jax.random.split(key)
    bound = 1.0 / jnp.sqrt(jnp.float32(fan_in))
    w = jax.random.uniform(kw, (fan_out, fan_in), jnp.float32, -bound, bound)
    b = jax.random.uniform(kb, (fan_out,), jnp.float32, -bound, bound)
    return w, b


def _reference_fm(x_fm, w1, b1, w2, b2, w3, b3):
    """Feature-major reference mirroring nn.Linear, f32-exact dots."""
    hp = jax.lax.Precision.HIGHEST
    h1 = jnp.maximum(jnp.dot(w1, x_fm, precision=hp) + b1.reshape(-1, 1), 0.0)
    h2 = jnp.maximum(jnp.dot(w2, h1, precision=hp) + b2.reshape(-1, 1), 0.0)
    return jnp.dot(w3, h2, precision=hp) + b3.reshape(-1, 1)


if __name__ == "__main__":
    key = jax.random.PRNGKey(0)
    kx, k1, k2, k3 = jax.random.split(key, 4)

    # Batch chosen NOT to be a multiple of the tile so the ragged last block
    # (clamped boundary DMA) and the even-grid chooser are both exercised.
    batch = 5000
    x_fm = jax.random.uniform(kx, (D_IN, batch), jnp.float32)   # feature-major [4, N]

    w1, b1 = _init_linear(k1, D_IN, D_H1)
    w2, b2 = _init_linear(k2, D_H1, D_H2)
    w3, b3 = _init_linear(k3, D_H2, D_OUT)

    ref = _reference_fm(x_fm, w1, b1, w2, b2, w3, b3)

    # --- production path: feature-major, f32 in / f32 out --------------------
    out_fm = jax.block_until_ready(mlp_forward_fm(x_fm, w1, b1, w2, b2, w3, b3))
    assert out_fm.shape == (D_OUT, batch) and out_fm.dtype == jnp.float32
    assert jnp.allclose(out_fm, ref, atol=5e-4, rtol=5e-4), "f32 feature-major mismatch"

    # --- PyTorch-parity batch-major wrapper ----------------------------------
    out_bm = jax.block_until_ready(mlp_forward(x_fm.T, w1, b1, w2, b2, w3, b3))
    assert out_bm.shape == (batch, D_OUT)
    assert jnp.allclose(out_bm, ref.T, atol=5e-4, rtol=5e-4), "batch-major mismatch"

    # --- bf16-x DMA option (v6e/v7x bandwidth; math stays f32 in-kernel) -----
    x_bf = x_fm.astype(jnp.bfloat16)
    out_bf = jax.block_until_ready(mlp_forward_fm(x_bf, w1, b1, w2, b2, w3, b3))
    ref_bf = _reference_fm(x_bf.astype(jnp.float32), w1, b1, w2, b2, w3, b3)
    assert out_bf.shape == (D_OUT, batch)
    assert jnp.allclose(out_bf, ref_bf, atol=5e-4, rtol=5e-4), "bf16-x mismatch"

    # --- bf16 output option (quantizes results; validate downstream) ---------
    out_o16 = jax.block_until_ready(
        mlp_forward_fm(x_fm, w1, b1, w2, b2, w3, b3, out_dtype=jnp.bfloat16))
    assert out_o16.dtype == jnp.bfloat16
    assert jnp.allclose(out_o16.astype(jnp.float32), ref, atol=3e-2, rtol=3e-2), \
        "bf16-out mismatch"

    print("KERNEL_OK")
</pallas_src>

<mosaic_0001>
module attributes {stable_mosaic.version = 11 : i64} {
  func.func @_mlp_kernel(%arg0: i32, %arg1: memref<4x1664xf32, #tpu.memory_space<vmem>>, %arg2: memref<33x4xf32, #tpu.memory_space<vmem>>, %arg3: memref<33x1xf32, #tpu.memory_space<vmem>>, %arg4: memref<17x33xf32, #tpu.memory_space<vmem>>, %arg5: memref<7x17xf32, #tpu.memory_space<vmem>>, %arg6: memref<7x1664xf32, #tpu.memory_space<vmem>>) attributes {dimension_semantics = [#tpu.dimension_semantics<parallel>], iteration_bounds = array<i64: 4>, scalar_prefetch = 0 : i64, scratch_operands = 0 : i64, tpu.core_type = #tpu.core_type<tc>, window_params = [{transform_indices = @transform_0, window_bounds = array<i64: 4, 1664>}, {pipeline_mode = #tpu.pipeline_mode<synchronous>, transform_indices = @transform_1, window_bounds = array<i64: 33, 4>}, {pipeline_mode = #tpu.pipeline_mode<synchronous>, transform_indices = @transform_2, window_bounds = array<i64: 33, 1>}, {pipeline_mode = #tpu.pipeline_mode<synchronous>, transform_indices = @transform_3, window_bounds = array<i64: 17, 33>}, {pipeline_mode = #tpu.pipeline_mode<synchronous>, transform_indices = @transform_4, window_bounds = array<i64: 7, 17>}, {transform_indices = @transform_5, window_bounds = array<i64: 7, 1664>}]} {
    %c0 = arith.constant 0 : index
    %c0_0 = arith.constant 0 : index
    %0 = vector.load %arg1[%c0, %c0_0] : memref<4x1664xf32, #tpu.memory_space<vmem>>, vector<4x1664xf32>
    %c0_1 = arith.constant 0 : index
    %c0_2 = arith.constant 0 : index
    %1 = vector.load %arg2[%c0_1, %c0_2] : memref<33x4xf32, #tpu.memory_space<vmem>>, vector<33x4xf32>
    %cst = arith.constant dense<0.000000e+00> : vector<33x1664xf32>
    %2 = tpu.matmul %1, %0, %cst {dimension_numbers = #tpu.dot_dimension_numbers<[1], [0], [0], [1], [0, 0, 1, 1], [], []>} : vector<33x4xf32>, vector<4x1664xf32>, vector<33x1664xf32> -> vector<33x1664xf32>
    %c0_3 = arith.constant 0 : index
    %c0_4 = arith.constant 0 : index
    %3 = vector.load %arg3[%c0_3, %c0_4] : memref<33x1xf32, #tpu.memory_space<vmem>>, vector<33x1xf32>
    %4 = vector.broadcast %3 : vector<33x1xf32> to vector<33x1664xf32>
    %5 = arith.addf %2, %4 : vector<33x1664xf32>
    %cst_5 = arith.constant 0.000000e+00 : f32
    %6 = vector.broadcast %cst_5 : f32 to vector<33x1664xf32>
    %7 = arith.maximumf %5, %6 : vector<33x1664xf32>
    %c0_6 = arith.constant 0 : index
    %c0_7 = arith.constant 0 : index
    %8 = vector.load %arg4[%c0_6, %c0_7] : memref<17x33xf32, #tpu.memory_space<vmem>>, vector<17x33xf32>
    %cst_8 = arith.constant dense<0.000000e+00> : vector<17x1664xf32>
    %9 = tpu.matmul %8, %7, %cst_8 {dimension_numbers = #tpu.dot_dimension_numbers<[1], [0], [0], [1], [0, 0, 1, 1], [], []>} : vector<17x33xf32>, vector<33x1664xf32>, vector<17x1664xf32> -> vector<17x1664xf32>
    %cst_9 = arith.constant 0.000000e+00 : f32
    %10 = vector.broadcast %cst_9 : f32 to vector<17x1664xf32>
    %11 = arith.maximumf %9, %10 : vector<17x1664xf32>
    %c0_10 = arith.constant 0 : index
    %c0_11 = arith.constant 0 : index
    %12 = vector.load %arg5[%c0_10, %c0_11] : memref<7x17xf32, #tpu.memory_space<vmem>>, vector<7x17xf32>
    %cst_12 = arith.constant dense<0.000000e+00> : vector<7x1664xf32>
    %13 = tpu.matmul %12, %11, %cst_12 {dimension_numbers = #tpu.dot_dimension_numbers<[1], [0], [0], [1], [0, 0, 1, 1], [], []>} : vector<7x17xf32>, vector<17x1664xf32>, vector<7x1664xf32> -> vector<7x1664xf32>
    %c0_13 = arith.constant 0 : index
    %c0_14 = arith.constant 0 : index
    %14 = vector.load %arg6[%c0_13, %c0_14] : memref<7x1664xf32, #tpu.memory_space<vmem>>, vector<7x1664xf32>
    tpu.vector_store %arg6[%c0_13, %c0_14], %13 {strides = array<i32>} : memref<7x1664xf32, #tpu.memory_space<vmem>>, vector<7x1664xf32>,
    return
  }
  func.func @transform_0(%arg0: i32) -> (i32, i32) {
    %c0_i32 = arith.constant 0 : i32
    %c0_i32_0 = arith.constant 0 : i32
    return %c0_i32, %arg0 : i32, i32
  }
  func.func @transform_1(%arg0: i32) -> (i32, i32) {
    %c0_i32 = arith.constant 0 : i32
    %c0_i32_0 = arith.constant 0 : i32
    %c0_i32_1 = arith.constant 0 : i32
    return %c0_i32, %c0_i32_0 : i32, i32
  }
  func.func @transform_2(%arg0: i32) -> (i32, i32) {
    %c0_i32 = arith.constant 0 : i32
    %c0_i32_0 = arith.constant 0 : i32
    %c0_i32_1 = arith.constant 0 : i32
    return %c0_i32, %c0_i32_0 : i32, i32
  }
  func.func @transform_3(%arg0: i32) -> (i32, i32) {
    %c0_i32 = arith.constant 0 : i32
    %c0_i32_0 = arith.constant 0 : i32
    %c0_i32_1 = arith.constant 0 : i32
    return %c0_i32, %c0_i32_0 : i32, i32
  }
  func.func @transform_4(%arg0: i32) -> (i32, i32) {
    %c0_i32 = arith.constant 0 : i32
    %c0_i32_0 = arith.constant 0 : i32
    %c0_i32_1 = arith.constant 0 : i32
    return %c0_i32, %c0_i32_0 : i32, i32
  }
  func.func @transform_5(%arg0: i32) -> (i32, i32) {
    %c0_i32 = arith.constant 0 : i32
    %c0_i32_0 = arith.constant 0 : i32
    return %c0_i32, %arg0 : i32, i32
  }
}

</mosaic_0001>

<bundles_post_ra>
// kernel: mlp_forward_fm.1
= control target key start
LH: loop header
LB: loop body
LE: loop exit
PB: predicated region body
PF: predicated region fallthrough
CT: control target
= control target key end

     0   :  { %10 = vsyncpa [#allocation3], 0  ;;  %s2575_s0 = inlined_call_operand.vmem [shape: f32[4,5000], index: 0, kind: input, shape index: {}]   ;;  %s2576_s1 = inlined_call_operand.vmem [shape: f32[33,4], index: 1, kind: input, shape index: {}]   ;;  %s2577_s2 = inlined_call_operand.vmem [shape: f32[33,1], index: 2, kind: input, shape index: {}]   ;;  %s2578_s3 = inlined_call_operand.vmem [shape: f32[17,33], index: 3, kind: input, shape index: {}]   ;;  %s2579_s4 = inlined_call_operand.vmem [shape: f32[7,17], index: 4, kind: input, shape index: {}]   ;;  %s2580_s5 = inlined_call_operand.hbm [shape: f32[7,5000], index: 5, kind: output, shape index: {}]  }
   0x1   :  { %12 = vsyncpa [#allocation3 + $0x1], 0  ;;  %s1995_s18 = smov 0   ;;  %s1997_s19 = smov 0  }
   0x2   :  { %s1999_s20 = smov 0   ;;  %s2001_s21 = smov 0  }
   0x3 LB: > { %s2016_s22 = sadd.s32 4294967295, %s1961_s21   ;;  %s1676_s23 = sadd.s32 4294967294, %s1961_s21   ;;  %s1961_s21 = sphi %s2001_s21, %s2587_s21   ;;  %s1957_s20 = sphi %s1999_s20, %s2586_s20   ;;  %s1953_s19 = sphi %s1997_s19, %s2585_s19   ;;  %s1949_s18 = sphi %s1995_s18, %s2584_s18  }
   0x4   : > { %s2020_s24 = sadd.s32 1, %s1961_s21   ;;  %s135_s25 = sadd.s32 1, %s1957_s20 }
   0x5   : > { %s132_s26 = ssub.s32 %s1961_s21, %s2020_s24  ;;  %p145_p0 = scmp.ne.s32.totalorder %s1957_s20, %s1953_s19 }
   0x6   : > { %p133_p1 = scmp.eq.s32.totalorder %s132_s26, 0  ;;  %p146_p2 = scmp.eq.s32.totalorder %s2016_s22, 3 }
   0x7   : > { %p151_p3 = scmp.ne.s32.totalorder %s1953_s19, %s1949_s18  ;;  %p152_p4 = scmp.eq.s32.totalorder %s1676_s23, 3 }
   0x8   : > { %s2031_s27 = scalar_select %p133_p1, %s1957_s20, %s135_s25  }
   0x9   : > { %p2033_p5 = por %p146_p2, %p145_p0  ;;  %p2037_p6 = por %p152_p4, %p151_p3 }
   0xa   : > { %p1679_p7 = scmp.ge.s32.totalorder %s1961_s21, 1  ;;  %p199_p8 = scmp.lt.s32.totalorder %s1961_s21, 5 }
   0xc   : > { %p200_p9 = pnand %p1679_p7, %p199_p8 }
   0xd   : > { %s2044_s30 = smul.u32 (!%p200_p9), 13, %s2016_s22 }
   0xe   : > { %203 = sbr.rel (%p200_p9) target bundleno = 637 (0x27d), region = 40 }
   0xf   : > { %p236_p10 = scmp.lt.s32.totalorder (!%p200_p9), %s2044_s30, 39 }
  0x13   : > { %v1963_v0 = vmov 0   ;;  %v264_v1 = vld [vmem:[%s2577_s2 + $0x10] sm:$0xff]  ;;  %s237_s8 = scalar_select %p236_p10, %s2044_s30, 39  ;;  %v263_v2 = vld [vmem:[%s2577_s2 + $0x8] sm:$0xff]  ;;  %v266_v6 = vld [vmem:[%s2577_s2 + $0x20] sm:$0x1] }
  0x14   : > { %1886 = vset.pattern.permute.xlu1 %v1963_v0  ;;  %1885 = vset.pattern.permute.xlu0 %v1963_v0  ;;  %vm338_vm0 = vcmask 1043456   ;;  %v2070_v9 = vld [vmem:[%s2576_s1] sm:$0xff]  ;;  %vm322_vm1 = vcmask 31744   ;;  %v265_v16 = vld [vmem:[%s2577_s2 + $0x18] sm:$0xff]  ;;  %v2097_v20 = vld [vmem:[%s2576_s1 + $0x8] sm:$0xff]  ;;  %vm859_vm2 = vcmask 1040384  }
  0x15   : > { %279 = vperm.xlu1 %1886, %v264_v1   ;;  %1887 = vset.pattern.permute.xlu2 %v1963_v0  ;;  %s1680_s9 = sshll.u32 %s237_s8, 2  ;;  %v262_v17 = vld [vmem:[%s2577_s2] sm:$0xff]  ;;  %v2112_v23 = vld [vmem:[%s2576_s1 + $0x10] sm:$0xff]  ;;  %v2126_v25 = vld [vmem:[%s2576_s1 + $0x18] sm:$0xff]  ;;  %vm849_vm3 = vcmask 269312   ;;  %vm1277_vm4 = vcmask 138240  }
  0x16   : > { %s2054_s12 = scalar_lea.vmem %s2575_s0, %s1680_s9  ;;  %289 = vperm.xlu0 %1885, %v266_v6   ;;  %269 = vperm.xlu2 %1887, %v262_v17   ;;  %v2139_v26 = vld [vmem:[%s2576_s1 + $0x20] sm:$0x1]  ;;  %s228_s9 = sand.u32 1, %s1953_s19  }
  0x17   : > { %v250_v3 = vld [vmem:[%s2054_s12] sm:$0xff]  ;;  %v251_v4 = vld [vmem:[%s2054_s12 + $0x8] sm:$0xff]  ;;  %v252_v5 = vld [vmem:[%s2054_s12 + $0x10] sm:$0xff]  ;;  %s1845_s10 = smul.u32 104, %s228_s9  ;;  %s1602_s13 = ssub.s32 (%p2033_p5), 40, %s2044_s30 }
  0x18   : > { %299 = vst [vmem:[#allocation1] ss:$2 sm:$0xff] %v250_v3  ;;  %v254_v7 = vld [vmem:[%s2054_s12 + $0x20] sm:$0xff]  ;;  %v255_v8 = vld [vmem:[%s2054_s12 + $0x28] sm:$0xff]  ;;  %v253_v15 = vld [vmem:[%s2054_s12 + $0x18] sm:$0xff]  ;;  %p1603_p11 = scmp.lt.s32.totalorder (%p2033_p5), %s1602_s13, 13 }
  0x19   : > { %301 = vst [vmem:[#allocation1 + $0x10] ss:$2 sm:$0xff] %v251_v4  ;;  %v256_v18 = vld [vmem:[%s2054_s12 + $0x30] sm:$0xf]  ;;  %s2501_s11 = scalar_lea.vmem [#allocation2], %s1845_s10  ;;  %s2518_s12 = scalar_lea.sflag [#allocation3], %s228_s9 }
  0x1a   : > { %303 = vst [vmem:[#allocation1 + $0x20] ss:$2 sm:$0xff] %v252_v5 }
  0x1b   : > { %305 = vst [vmem:[#allocation1 + $0x30] ss:$2 sm:$0xff] %v253_v15 }
  0x1d   : > { %274 = vperm.xlu1 %1886, %v263_v2  }
  0x1e   : > { %284 = vperm.xlu0 %1885, %v265_v16  }
  0x1f   : > { %v306_v10 = vld.sshfl [vmem:[#allocation1] sm:$0xff pattern:$0x75316420]  ;;  %v307_v11 = vld.sshfl [vmem:[#allocation1 + $0x8] sm:$0xff pattern:$0x75316420] }
  0x20   : > { %1681 = vmatpush.msk.msra.mxu0 %vm338_vm0, %v306_v10  ;;  %314 = vst [vmem:[#allocation1] ss:$2 sm:$0xff] %v254_v7  ;;  %1687 = vmatpush.msk.msra.mxu1 %vm338_vm0, %v307_v11  ;;  %v308_v12 = vld.sshfl [vmem:[#allocation1 + $0x10] sm:$0xff pattern:$0x75316420] }
  0x21   : > { %1693 = vmatpush.msk.msra.mxu2 %vm338_vm0, %v308_v12  ;;  %v309_v13 = vld.sshfl [vmem:[#allocation1 + $0x18] sm:$0xff pattern:$0x75316420]  ;;  %1682 = vmatmul.msk.f32.vlgmr.msra.gmra.mxu0 %vm322_vm1, %v2070_v9  ;;  %v310_v14 = vld.sshfl [vmem:[#allocation1 + $0x20] sm:$0xff pattern:$0x75316420] }
  0x22   : > { %315 = vst [vmem:[#allocation1 + $0x10] ss:$2 sm:$0xff] %v255_v8  ;;  %1699 = vmatpush.msk.msra.mxu3 %vm338_vm0, %v309_v13  ;;  %1688 = vmatmul.msk.f32.vlgmr.msra.gmra.mxu1 %vm322_vm1, %v2070_v9  ;;  %v311_v19 = vld.sshfl [vmem:[#allocation1 + $0x28] sm:$0xff pattern:$0x75316420] }
  0x23   : > { %1694 = vmatmul.msk.f32.vlgmr.msra.gmra.mxu2 %vm322_vm1, %v2070_v9  ;;  %1700 = vmatmul.msk.f32.vlgmr.msra.gmra.mxu3 %vm322_vm1, %v2070_v9  ;;  %316 = vst [vmem:[#allocation1 + $0x20] ss:$2 sm:$0xff] %v256_v18  ;;  %v312_v21 = vld.sshfl [vmem:[#allocation1 + $0x30] sm:$0xff pattern:$0x75316420] }
  0x24   : > { %1705 = vmatpush.msk.msrb.mxu0 %vm338_vm0, %v310_v14  ;;  %1711 = vmatpush.msk.msrb.mxu1 %vm338_vm0, %v311_v19  ;;  %v313_v22 = vld.sshfl [vmem:[#allocation1 + $0x38] sm:$0xff pattern:$0x75316420] }
  0x25   : > { %1717 = vmatpush.msk.msrb.mxu2 %vm338_vm0, %v312_v21  ;;  %1723 = vmatpush.msk.msrb.mxu3 %vm338_vm0, %v313_v22 }
  0x27   : > { %v317_v24 = vld.sshfl [vmem:[#allocation1] sm:$0xff pattern:$0x75316420]  ;;  %v318_v27 = vld.sshfl [vmem:[#allocation1 + $0x8] sm:$0xff pattern:$0x75316420] }
  0x28   : > { %1729 = vmatpush.msk.msra.mxu0 %vm338_vm0, %v317_v24  ;;  %1735 = vmatpush.msk.msra.mxu1 %vm338_vm0, %v318_v27  ;;  %v2285_v27 = vld [vmem:[%s2578_s3] sm:$0xff] }
  0x29   : > { %1683 = vmatmul.msk.f32.gmra.mxu0 %vm322_vm1, %v2097_v20  ;;  %v319_v28 = vld.sshfl [vmem:[#allocation1 + $0x10] sm:$0xff pattern:$0x75316420]  ;;  %v320_v29 = vld.sshfl [vmem:[#allocation1 + $0x18] sm:$0xff pattern:$0x75316420] }
  0x2a   : > { %1689 = vmatmul.msk.f32.gmra.mxu1 %vm322_vm1, %v2097_v20  ;;  %1741 = vmatpush.msk.msra.mxu2 %vm338_vm0, %v319_v28  ;;  %v321_v30 = vld.sshfl [vmem:[#allocation1 + $0x20] sm:$0xff pattern:$0x75316420] }
  0x2b   : > { %1695 = vmatmul.msk.f32.gmra.mxu2 %vm322_vm1, %v2097_v20  ;;  %1701 = vmatmul.msk.f32.gmra.mxu3 %vm322_vm1, %v2097_v20 }
  0x2c   : > { %1747 = vmatpush.msk.msra.mxu3 %vm338_vm0, %v320_v29 }
  0x31   : > { %1684 = vmatmul.msk.f32.gmra.mxu0 %vm322_vm1, %v2112_v23 }
  0x32   : > { %1690 = vmatmul.msk.f32.gmra.mxu1 %vm322_vm1, %v2112_v23 }
  0x33   : > { %1696 = vmatmul.msk.f32.gmra.mxu2 %vm322_vm1, %v2112_v23  ;;  %1702 = vmatmul.msk.f32.gmra.mxu3 %vm322_vm1, %v2112_v23 }
  0x39   : > { %1685 = vmatmul.msk.f32.gmra.mxu0 %vm322_vm1, %v2126_v25 }
  0x3a   : > { %1691 = vmatmul.msk.f32.gmra.mxu1 %vm322_vm1, %v2126_v25 }
  0x3b   : > { %1697 = vmatmul.msk.f32.gmra.mxu2 %vm322_vm1, %v2126_v25  ;;  %1703 = vmatmul.msk.f32.gmra.mxu3 %vm322_vm1, %v2126_v25 }
  0x41   : > { %1686 = vmatmul.msk.f32.gmra.mxu0 %vm322_vm1, %v2139_v26 }
  0x42   : > { %1692 = vmatmul.msk.f32.gmra.mxu1 %vm322_vm1, %v2139_v26 }
  0x43   : > { %1698 = vmatmul.msk.f32.gmra.mxu2 %vm322_vm1, %v2139_v26  ;;  %1704 = vmatmul.msk.f32.gmra.mxu3 %vm322_vm1, %v2139_v26 }
  0x49   : > { %1706 = vmatmul.msk.f32.vlgmr.msrb.gmra.mxu0 %vm322_vm1, %v2070_v9 }
  0x4a   : > { %1712 = vmatmul.msk.f32.vlgmr.msrb.gmra.mxu1 %vm322_vm1, %v2070_v9  ;;  %1753 = vmatpush.msk.msrb.mxu0 %vm338_vm0, %v321_v30 }
  0x4b   : > { %1718 = vmatmul.msk.f32.vlgmr.msrb.gmra.mxu2 %vm322_vm1, %v2070_v9  ;;  %1724 = vmatmul.msk.f32.vlgmr.msrb.gmra.mxu3 %vm322_vm1, %v2070_v9 }
  0x51   : > { %1707 = vmatmul.msk.f32.gmra.mxu0 %vm322_vm1, %v2097_v20 }
  0x52   : > { %1713 = vmatmul.msk.f32.gmra.mxu1 %vm322_vm1, %v2097_v20 }
  0x53   : > { %1719 = vmatmul.msk.f32.gmra.mxu2 %vm322_vm1, %v2097_v20  ;;  %1725 = vmatmul.msk.f32.gmra.mxu3 %vm322_vm1, %v2097_v20 }
  0x59   : > { %1708 = vmatmul.msk.f32.gmra.mxu0 %vm322_vm1, %v2112_v23 }
  0x5a   : > { %1714 = vmatmul.msk.f32.gmra.mxu1 %vm322_vm1, %v2112_v23 }
  0x5b   : > { %1720 = vmatmul.msk.f32.gmra.mxu2 %vm322_vm1, %v2112_v23  ;;  %1726 = vmatmul.msk.f32.gmra.mxu3 %vm322_vm1, %v2112_v23 }
  0x61   : > { %1709 = vmatmul.msk.f32.gmra.mxu0 %vm322_vm1, %v2126_v25 }
  0x62   : > { %1715 = vmatmul.msk.f32.gmra.mxu1 %vm322_vm1, %v2126_v25 }
  0x63   : > { %1721 = vmatmul.msk.f32.gmra.mxu2 %vm322_vm1, %v2126_v25  ;;  %1727 = vmatmul.msk.f32.gmra.mxu3 %vm322_vm1, %v2126_v25 }
  0x69   : > { %1710 = vmatmul.msk.f32.gmra.mxu0 %vm322_vm1, %v2139_v26 }
  0x6a   : > { %1716 = vmatmul.msk.f32.gmra.mxu1 %vm322_vm1, %v2139_v26 }
  0x6b   : > { %1722 = vmatmul.msk.f32.gmra.mxu2 %vm322_vm1, %v2139_v26  ;;  %1728 = vmatmul.msk.f32.gmra.mxu3 %vm322_vm1, %v2139_v26 }
  0x70   : > { %v2262_v63 = vpop.permute.xlu2 %269 }
  0x71   : > { %1730 = vmatmul.msk.f32.vlgmr.msra.gmra.mxu0 %vm322_vm1, %v2070_v9 }
  0x72   : > { %1736 = vmatmul.msk.f32.vlgmr.msra.gmra.mxu1 %vm322_vm1, %v2070_v9 }
  0x73   : > { %1742 = vmatmul.msk.f32.vlgmr.msra.gmra.mxu2 %vm322_vm1, %v2070_v9  ;;  %1748 = vmatmul.msk.f32.vlgmr.msra.gmra.mxu3 %vm322_vm1, %v2070_v9 }
  0x79   : > { %1731 = vmatmul.msk.f32.gmra.mxu0 %vm322_vm1, %v2097_v20 }
  0x7a   : > { %1737 = vmatmul.msk.f32.gmra.mxu1 %vm322_vm1, %v2097_v20 }
  0x7b   : > { %1743 = vmatmul.msk.f32.gmra.mxu2 %vm322_vm1, %v2097_v20  ;;  %1749 = vmatmul.msk.f32.gmra.mxu3 %vm322_vm1, %v2097_v20 }
  0x81   : > { %1732 = vmatmul.msk.f32.gmra.mxu0 %vm322_vm1, %v2112_v23 }
  0x82   : > { %1738 = vmatmul.msk.f32.gmra.mxu1 %vm322_vm1, %v2112_v23 }
  0x83   : > { %1744 = vmatmul.msk.f32.gmra.mxu2 %vm322_vm1, %v2112_v23  ;;  %1750 = vmatmul.msk.f32.gmra.mxu3 %vm322_vm1, %v2112_v23 }
  0x87   : > { %v2247_v42 = vpop.permute.xlu1 %279 }
  0x88   : > { %v2245_v41 = vpop.permute.xlu0 %289 }
  0x89   : > { %1733 = vmatmul.msk.f32.gmra.mxu0 %vm322_vm1, %v2126_v25 }
  0x8a   : > { %1739 = vmatmul.msk.f32.gmra.mxu1 %vm322_vm1, %v2126_v25 }
  0x8b   : > { %1745 = vmatmul.msk.f32.gmra.mxu2 %vm322_vm1, %v2126_v25  ;;  %1751 = vmatmul.msk.f32.gmra.mxu3 %vm322_vm1, %v2126_v25 }
  0x8f   : > { %v2254_v53 = vpop.permute.xlu1 %274 }
  0x90   : > { %v2251_v47 = vpop.permute.xlu0 %284 }
  0x91   : > { %1734 = vmatmul.msk.f32.gmra.mxu0 %vm322_vm1, %v2139_v26 }
  0x92   : > { %1740 = vmatmul.msk.f32.gmra.mxu1 %vm322_vm1, %v2139_v26 }
  0x93   : > { %1746 = vmatmul.msk.f32.gmra.mxu2 %vm322_vm1, %v2139_v26  ;;  %1752 = vmatmul.msk.f32.gmra.mxu3 %vm322_vm1, %v2139_v26 }
  0x99   : > { %1754 = vmatmul.msk.f32.vlgmr.msrb.gmra.mxu0 %vm322_vm1, %v2070_v9 }
  0x9e   : > { %v382_v31 = vpop.f32.mrf.mxu0 }
  0x9f   : > { %v414_v32 = vpop.f32.mrf.mxu1  ;;  %v383_v5 = vadd.f32 %v382_v31, %v2262_v63 }
  0xa0   : > { %v415_v0 = vadd.f32 %v414_v32, %v2262_v63 }
  0xa1   : > { %1755 = vmatmul.msk.f32.gmra.mxu0 %vm322_vm1, %v2097_v20 }
  0xa2   : > { %v782_v16 = vmax.f32 %v415_v0, 0.0 }
  0xa6   : > { %v2237_v33 = vpop.f32.mrf.mxu2  ;;  %v2239_v34 = vpop.f32.mrf.mxu3 }
  0xa7   : > { %v385_v35 = vpop.f32.mrf.mxu0  ;;  %v417_v36 = vpop.f32.mrf.mxu1  ;;  %v447_v28 = vadd.f32 %v2237_v33, %v2262_v63 }
  0xa8   : > { %v418_v58 = vadd.f32 %v417_v36, %v2254_v53  ;;  %v386_v1 = vadd.f32 %v385_v35, %v2254_v53  ;;  %v479_v35 = vadd.f32 %v2239_v34, %v2262_v63 }
  0xa9   : > { %1756 = vmatmul.msk.f32.gmra.mxu0 %vm322_vm1, %v2112_v23  ;;  %v781_v23 = vmax.f32 %v383_v5, 0.0 }
  0xaa   : > { %v795_v6 = vmax.f32 %v418_v58, 0.0  ;;  %v794_v17 = vmax.f32 %v386_v1, 0.0 }
  0xae   : > { %v449_v37 = vpop.f32.mrf.mxu2  ;;  %v481_v38 = vpop.f32.mrf.mxu3 }
  0xaf   : > { %v388_v39 = vpop.f32.mrf.mxu0  ;;  %v420_v40 = vpop.f32.mrf.mxu1  ;;  %v450_v18 = vadd.f32 %v449_v37, %v2254_v53  ;;  %v482_v24 = vadd.f32 %v481_v38, %v2254_v53  ;;  %v783_v38 = vmax.f32 %v447_v28, 0.0 }
  0xb0   : > { %v421_v54 = vadd.f32 %v420_v40, %v2247_v42  ;;  %v389_v59 = vadd.f32 %v388_v39, %v2247_v42  ;;  %v784_v39 = vmax.f32 %v479_v35, 0.0  ;;  %v2303_v40 = vld [vmem:[%s2578_s3 + $0x8] sm:$0xff] }
  0xb1   : > { %1757 = vmatmul.msk.f32.gmra.mxu0 %vm322_vm1, %v2126_v25  ;;  %v796_v29 = vmax.f32 %v450_v18, 0.0  ;;  %v797_v36 = vmax.f32 %v482_v24, 0.0 }
  0xb2   : > { %v808_v2 = vmax.f32 %v421_v54, 0.0  ;;  %v807_v7 = vmax.f32 %v389_v59, 0.0 }
  0xb6   : > { %v452_v43 = vpop.f32.mrf.mxu2  ;;  %v484_v44 = vpop.f32.mrf.mxu3 }
  0xb7   : > { %v391_v45 = vpop.f32.mrf.mxu0  ;;  %v423_v46 = vpop.f32.mrf.mxu1  ;;  %v453_v10 = vadd.f32 %v452_v43, %v2247_v42  ;;  %v485_v19 = vadd.f32 %v484_v44, %v2247_v42 }
  0xb8   : > { %v424_v48 = vadd.f32 %v423_v46, %v2251_v47  ;;  %v392_v55 = vadd.f32 %v391_v45, %v2251_v47  ;;  %v2314_v46 = vld [vmem:[%s2578_s3 + $0x10] sm:$0x1] }
  0xb9   : > { %1758 = vmatmul.msk.f32.gmra.mxu0 %vm322_vm1, %v2139_v26  ;;  %v809_v25 = vmax.f32 %v453_v10, 0.0  ;;  %v810_v30 = vmax.f32 %v485_v19, 0.0 }
  0xba   : > { %v821_v60 = vmax.f32 %v424_v48, 0.0  ;;  %v820_v3 = vmax.f32 %v392_v55, 0.0 }
  0xbe   : > { %v455_v49 = vpop.f32.mrf.mxu2  ;;  %v487_v50 = vpop.f32.mrf.mxu3 }
  0xbf   : > { %v394_v51 = vpop.f32.mrf.mxu0  ;;  %v426_v52 = vpop.f32.mrf.mxu1  ;;  %v456_v4 = vadd.f32 %v455_v49, %v2251_v47  ;;  %v488_v11 = vadd.f32 %v487_v50, %v2251_v47 }
  0xc0   : > { %v395_v56 = vadd.f32 %v394_v51, %v2245_v41  ;;  %v427_v57 = vadd.f32 %v426_v52, %v2245_v41 }
  0xc1   : > { %v822_v20 = vmax.f32 %v456_v4, 0.0  ;;  %v823_v26 = vmax.f32 %v488_v11, 0.0 }
  0xc2   : > { %v833_v61 = vmax.f32 %v395_v56, 0.0  ;;  %v834_v62 = vmax.f32 %v427_v57, 0.0 }
  0xc4   : > { %1759 = vmatpush.msk.msrb.mxu1 %vm859_vm2, %v833_v61  ;;  %1763 = vmatpush.msk.msrb.mxu2 %vm859_vm2, %v834_v62 }
  0xc6   : > { %v458_v8 = vpop.f32.mrf.mxu2  ;;  %v490_v9 = vpop.f32.mrf.mxu3  ;;  %911 = vmatpush.msrb.mxu1 %v820_v3  ;;  %937 = vmatpush.msrb.mxu2 %v821_v60 }
  0xc7   : > { %v459_v12 = vadd.f32 %v458_v8, %v2245_v41  ;;  %v491_v13 = vadd.f32 %v490_v9, %v2245_v41  ;;  %v2274_v14 = vpop.f32.mrf.mxu0  ;;  %v2276_v15 = vpop.f32.mrf.mxu1 }
  0xc8   : > { %912 = vmatpush.msrb.mxu1 %v807_v7  ;;  %938 = vmatpush.msrb.mxu2 %v808_v2  ;;  %v543_v4 = vadd.f32 %v2276_v15, %v2262_v63  ;;  %v511_v8 = vadd.f32 %v2274_v14, %v2262_v63 }
  0xc9   : > { %v835_v21 = vmax.f32 %v459_v12, 0.0  ;;  %v836_v22 = vmax.f32 %v491_v13, 0.0 }
  0xca   : > { %913 = vmatpush.msrb.mxu1 %v794_v17  ;;  %939 = vmatpush.msrb.mxu2 %v795_v6  ;;  %v786_v14 = vmax.f32 %v543_v4, 0.0 }
  0xcb   : > { %1767 = vmatpush.msk.msrb.mxu3 %vm859_vm2, %v835_v21 }
  0xcc   : > { %914 = vmatpush.msrb.mxu1 %v781_v23  ;;  %940 = vmatpush.msrb.mxu2 %v782_v16 }
  0xcd   : > { %963 = vmatpush.msrb.mxu3 %v822_v20  ;;  %1760 = vmatmul.msk.f32.vlgmr.msrb.gmra.mxu1 %vm849_vm3, %v2285_v27 }
  0xce   : > { %1771 = vmatpush.msk.msra.mxu1 %vm859_vm2, %v836_v22  ;;  %v2290_v31 = vpop.f32.mrf.mxu2  ;;  %v2292_v32 = vpop.f32.mrf.mxu3  ;;  %1764 = vmatmul.msk.f32.vlgmr.msrb.gmra.mxu2 %vm849_vm3, %v2285_v27 }
  0xcf   : > { %964 = vmatpush.msrb.mxu3 %v809_v25  ;;  %v513_v33 = vpop.f32.mrf.mxu0  ;;  %v545_v37 = vpop.f32.mrf.mxu1  ;;  %v785_v25 = vmax.f32 %v511_v8, 0.0  ;;  %v575_v35 = vadd.f32 %v2290_v31, %v2262_v63 }
  0xd0   : > { %989 = vmatpush.msra.mxu1 %v823_v26  ;;  %v546_v62 = vadd.f32 %v545_v37, %v2254_v53  ;;  %v514_v5 = vadd.f32 %v513_v33, %v2254_v53 }
  0xd1   : > { %965 = vmatpush.msrb.mxu3 %v796_v29 }
  0xd2   : > { %990 = vmatpush.msra.mxu1 %v810_v30  ;;  %v799_v9 = vmax.f32 %v546_v62, 0.0  ;;  %v798_v20 = vmax.f32 %v514_v5, 0.0 }
  0xd3   : > { %966 = vmatpush.msrb.mxu3 %v783_v38 }
  0xd4   : > { %991 = vmatpush.msra.mxu1 %v797_v36  ;;  %1768 = vmatmul.msk.f32.vlgmr.msrb.gmra.mxu3 %vm849_vm3, %v2285_v27  ;;  %v607_v36 = vadd.f32 %v2292_v32, %v2262_v63 }
  0xd5   : > { %1761 = vmatmul.msk.f32.gmra.mxu1 %vm849_vm3, %v2303_v40 }
  0xd6   : > { %992 = vmatpush.msra.mxu1 %v784_v39  ;;  %v577_v34 = vpop.f32.mrf.mxu2  ;;  %v609_v43 = vpop.f32.mrf.mxu3  ;;  %1765 = vmatmul.msk.f32.gmra.mxu2 %vm849_vm3, %v2303_v40 }
  0xd7   : > { %v516_v44 = vpop.f32.mrf.mxu0  ;;  %v548_v45 = vpop.f32.mrf.mxu1  ;;  %v578_v26 = vadd.f32 %v577_v34, %v2254_v53  ;;  %v610_v28 = vadd.f32 %v609_v43, %v2254_v53 }
  0xd8   : > { %v549_v58 = vadd.f32 %v548_v45, %v2247_v42  ;;  %v517_v0 = vadd.f32 %v516_v44, %v2247_v42  ;;  %v787_v44 = vmax.f32 %v575_v35, 0.0  ;;  %v788_v45 = vmax.f32 %v607_v36, 0.0 }
  0xd9   : > { %v800_v34 = vmax.f32 %v578_v26, 0.0  ;;  %v801_v43 = vmax.f32 %v610_v28, 0.0 }
  0xda   : > { %v812_v6 = vmax.f32 %v549_v58, 0.0  ;;  %v811_v10 = vmax.f32 %v517_v0, 0.0 }
  0xdc   : > { %1769 = vmatmul.msk.f32.gmra.mxu3 %vm849_vm3, %v2303_v40 }
  0xdd   : > { %1762 = vmatmul.msk.f32.gmra.mxu1 %vm849_vm3, %v2314_v46 }
  0xde   : > { %v580_v48 = vpop.f32.mrf.mxu2  ;;  %v612_v49 = vpop.f32.mrf.mxu3  ;;  %1766 = vmatmul.msk.f32.gmra.mxu2 %vm849_vm3, %v2314_v46 }
  0xdf   : > { %v519_v50 = vpop.f32.mrf.mxu0  ;;  %v551_v51 = vpop.f32.mrf.mxu1  ;;  %v581_v21 = vadd.f32 %v580_v48, %v2247_v42  ;;  %v613_v22 = vadd.f32 %v612_v49, %v2247_v42 }
  0xe0   : > { %v552_v52 = vadd.f32 %v551_v51, %v2251_v47  ;;  %v520_v59 = vadd.f32 %v519_v50, %v2251_v47 }
  0xe1   : > { %v813_v33 = vmax.f32 %v581_v21, 0.0  ;;  %v814_v37 = vmax.f32 %v613_v22, 0.0 }
  0xe2   : > { %v825_v1 = vmax.f32 %v552_v52, 0.0  ;;  %v824_v7 = vmax.f32 %v520_v59, 0.0 }
  0xe4   : > { %1770 = vmatmul.msk.f32.gmra.mxu3 %vm849_vm3, %v2314_v46 }
  0xe5   : > { %1772 = vmatmul.msk.f32.vlgmr.msra.gmra.mxu1 %vm849_vm3, %v2285_v27 }
  0xe6   : > { %v583_v54 = vpop.f32.mrf.mxu2  ;;  %v615_v55 = vpop.f32.mrf.mxu3 }
  0xe7   : > { %v522_v56 = vpop.f32.mrf.mxu0  ;;  %v554_v57 = vpop.f32.mrf.mxu1  ;;  %v584_v13 = vadd.f32 %v583_v54, %v2251_v47  ;;  %v616_v15 = vadd.f32 %v615_v55, %v2251_v47 }
  0xe8   : > { %v523_v60 = vadd.f32 %v522_v56, %v2245_v41  ;;  %v555_v61 = vadd.f32 %v554_v57, %v2245_v41 }
  0xe9   : > { %v826_v29 = vmax.f32 %v584_v13, 0.0  ;;  %v827_v30 = vmax.f32 %v616_v15, 0.0 }
  0xea   : > { %v837_v2 = vmax.f32 %v523_v60, 0.0  ;;  %v838_v3 = vmax.f32 %v555_v61, 0.0 }
  0xec   : > { %1775 = vmatpush.msk.msra.mxu2 %vm859_vm2, %v837_v2  ;;  %1779 = vmatpush.msk.msra.mxu3 %vm859_vm2, %v838_v3 }
  0xed   : > { %1773 = vmatmul.msk.f32.gmra.mxu1 %vm849_vm3, %v2303_v40 }
  0xee   : > { %v586_v11 = vpop.f32.mrf.mxu2  ;;  %v618_v12 = vpop.f32.mrf.mxu3  ;;  %1015 = vmatpush.msra.mxu2 %v824_v7  ;;  %1041 = vmatpush.msra.mxu3 %v825_v1 }
  0xef   : > { %v587_v16 = vadd.f32 %v586_v11, %v2245_v41  ;;  %v619_v17 = vadd.f32 %v618_v12, %v2245_v41  ;;  %v2344_v18 = vpop.f32.mrf.mxu0  ;;  %v2346_v19 = vpop.f32.mrf.mxu1 }
  0xf0   : > { %1016 = vmatpush.msra.mxu2 %v811_v10  ;;  %1042 = vmatpush.msra.mxu3 %v812_v6  ;;  %v639_v10 = vadd.f32 %v2344_v18, %v2262_v63  ;;  %v671_v11 = vadd.f32 %v2346_v19, %v2262_v63 }
  0xf1   : > { %v839_v23 = vmax.f32 %v587_v16, 0.0  ;;  %v840_v24 = vmax.f32 %v619_v17, 0.0 }
  0xf2   : > { %1017 = vmatpush.msra.mxu2 %v798_v20  ;;  %1043 = vmatpush.msra.mxu3 %v799_v9  ;;  %v789_v28 = vmax.f32 %v639_v10, 0.0 }
  0xf3   : > { %1783 = vmatpush.msk.msra.mxu0 %vm859_vm2, %v839_v23  ;;  %1787 = vmatpush.msk.msrb.mxu1 %vm859_vm2, %v840_v24 }
  0xf4   : > { %1018 = vmatpush.msra.mxu2 %v785_v25  ;;  %1044 = vmatpush.msra.mxu3 %v786_v14 }
  0xf5   : > { %1067 = vmatpush.msra.mxu0 %v826_v29  ;;  %1093 = vmatpush.msrb.mxu1 %v827_v30  ;;  %v790_v29 = vmax.f32 %v671_v11, 0.0 }
  0xf6   : > { %v2360_v38 = vpop.f32.mrf.mxu2  ;;  %v2362_v39 = vpop.f32.mrf.mxu3  ;;  %1776 = vmatmul.msk.f32.vlgmr.msra.gmra.mxu2 %vm849_vm3, %v2285_v27  ;;  %1780 = vmatmul.msk.f32.vlgmr.msra.gmra.mxu3 %vm849_vm3, %v2285_v27 }
  0xf7   : > { %1068 = vmatpush.msra.mxu0 %v813_v33  ;;  %1094 = vmatpush.msrb.mxu1 %v814_v37  ;;  %v641_v31 = vpop.f32.mrf.mxu0  ;;  %v673_v32 = vpop.f32.mrf.mxu1  ;;  %v703_v37 = vadd.f32 %v2360_v38, %v2262_v63 }
  0xf8   : > { %1774 = vmatmul.msk.f32.gmra.mxu1 %vm849_vm3, %v2314_v46  ;;  %v642_v6 = vadd.f32 %v641_v31, %v2254_v53  ;;  %v674_v7 = vadd.f32 %v673_v32, %v2254_v53 }
  0xf9   : > { %1069 = vmatpush.msra.mxu0 %v800_v34  ;;  %1095 = vmatpush.msrb.mxu1 %v801_v43  ;;  %v735_v34 = vadd.f32 %v2362_v39, %v2262_v63 }
  0xfa   : > { %v802_v23 = vmax.f32 %v642_v6, 0.0  ;;  %v803_v18 = vmax.f32 %v674_v7, 0.0 }
  0xfb   : > { %1070 = vmatpush.msra.mxu0 %v787_v44  ;;  %1096 = vmatpush.msrb.mxu1 %v788_v45  ;;  %v792_v38 = vmax.f32 %v735_v34, 0.0 }
  0xfc   : > { %1784 = vmatmul.msk.f32.vlgmr.msra.gmra.mxu0 %vm849_vm3, %v2285_v27 }
  0xfe   : > { %v705_v48 = vpop.f32.mrf.mxu2  ;;  %v737_v49 = vpop.f32.mrf.mxu3  ;;  %1777 = vmatmul.msk.f32.gmra.mxu2 %vm849_vm3, %v2303_v40  ;;  %1781 = vmatmul.msk.f32.gmra.mxu3 %vm849_vm3, %v2303_v40 }
  0xff   : > { %v644_v50 = vpop.f32.mrf.mxu0  ;;  %v676_v51 = vpop.f32.mrf.mxu1  ;;  %v706_v30 = vadd.f32 %v705_v48, %v2254_v53  ;;  %v738_v35 = vadd.f32 %v737_v49, %v2254_v53  ;;  %v791_v48 = vmax.f32 %v703_v37, 0.0 }
 0x100   : > { %1788 = vmatmul.msk.f32.vlgmr.msrb.gmra.mxu1 %vm849_vm3, %v2285_v27  ;;  %v645_v2 = vadd.f32 %v644_v50, %v2247_v42  ;;  %v677_v3 = vadd.f32 %v676_v51, %v2247_v42 }
 0x101   : > { %v804_v32 = vmax.f32 %v706_v30, 0.0  ;;  %v805_v44 = vmax.f32 %v738_v35, 0.0 }
 0x102   : > { %v815_v12 = vmax.f32 %v645_v2, 0.0  ;;  %v816_v13 = vmax.f32 %v677_v3, 0.0 }
 0x104   : > { %1785 = vmatmul.msk.f32.gmra.mxu0 %vm849_vm3, %v2303_v40 }
 0x106   : > { %v708_v52 = vpop.f32.mrf.mxu2  ;;  %v740_v54 = vpop.f32.mrf.mxu3  ;;  %1778 = vmatmul.msk.f32.gmra.mxu2 %vm849_vm3, %v2314_v46  ;;  %1782 = vmatmul.msk.f32.gmra.mxu3 %vm849_vm3, %v2314_v46 }
 0x107   : > { %v647_v55 = vpop.f32.mrf.mxu0  ;;  %v679_v56 = vpop.f32.mrf.mxu1  ;;  %v709_v19 = vadd.f32 %v708_v52, %v2247_v42  ;;  %v741_v24 = vadd.f32 %v740_v54, %v2247_v42 }
 0x108   : > { %1789 = vmatmul.msk.f32.gmra.mxu1 %vm849_vm3, %v2303_v40  ;;  %v648_v61 = vadd.f32 %v647_v55, %v2251_v47  ;;  %v680_v62 = vadd.f32 %v679_v56, %v2251_v47 }
 0x109   : > { %v817_v43 = vmax.f32 %v709_v19, 0.0  ;;  %v818_v31 = vmax.f32 %v741_v24, 0.0 }
 0x10a   : > { %v828_v8 = vmax.f32 %v648_v61, 0.0  ;;  %v829_v9 = vmax.f32 %v680_v62, 0.0 }
 0x10c   : > { %1786 = vmatmul.msk.f32.gmra.mxu0 %vm849_vm3, %v2314_v46 }
 0x10e   : > { %v711_v57 = vpop.f32.mrf.mxu2  ;;  %v743_v58 = vpop.f32.mrf.mxu3 }
 0x10f   : > { %v650_v59 = vpop.f32.mrf.mxu0  ;;  %v682_v60 = vpop.f32.mrf.mxu1  ;;  %v712_v17 = vadd.f32 %v711_v57, %v2251_v47  ;;  %v744_v14 = vadd.f32 %v743_v58, %v2251_v47 }
 0x110   : > { %v651_v0 = vadd.f32 %v650_v59, %v2245_v41  ;;  %v683_v1 = vadd.f32 %v682_v60, %v2245_v41  ;;  %1790 = vmatmul.msk.f32.gmra.mxu1 %vm849_vm3, %v2314_v46 }
 0x111   : > { %v830_v36 = vmax.f32 %v712_v17, 0.0  ;;  %v831_v33 = vmax.f32 %v744_v14, 0.0 }
 0x112   : > { %v841_v4 = vmax.f32 %v651_v0, 0.0  ;;  %v842_v5 = vmax.f32 %v683_v1, 0.0 }
 0x114   : > { %1791 = vmatpush.msk.msrb.mxu2 %vm859_vm2, %v841_v4  ;;  %1795 = vmatpush.msk.msrb.mxu3 %vm859_vm2, %v842_v5 }
 0x116   : > { %v714_v15 = vpop.f32.mrf.mxu2  ;;  %v746_v16 = vpop.f32.mrf.mxu3  ;;  %1119 = vmatpush.msrb.mxu2 %v828_v8  ;;  %1145 = vmatpush.msrb.mxu3 %v829_v9 }
 0x117   : > { %v715_v20 = vadd.f32 %v714_v15, %v2245_v41  ;;  %v747_v21 = vadd.f32 %v746_v16, %v2245_v41  ;;  %v766_v22 = vpop.f32.mrf.mxu0 }
 0x118   : > { %1120 = vmatpush.msrb.mxu2 %v815_v12  ;;  %1146 = vmatpush.msrb.mxu3 %v816_v13  ;;  %v767_v58 = vadd.f32 %v766_v22, %v2262_v63 }
 0x119   : > { %v843_v25 = vmax.f32 %v715_v20, 0.0  ;;  %v844_v26 = vmax.f32 %v747_v21, 0.0 }
 0x11a   : > { %1121 = vmatpush.msrb.mxu2 %v802_v23  ;;  %1147 = vmatpush.msrb.mxu3 %v803_v18  ;;  %v793_v61 = vmax.f32 %v767_v58, 0.0 }
 0x11b   : > { %1799 = vmatpush.msk.msrb.mxu0 %vm859_vm2, %v843_v25  ;;  %1803 = vmatpush.msk.msra.mxu1 %vm859_vm2, %v844_v26 }
 0x11c   : > { %1122 = vmatpush.msrb.mxu2 %v789_v28  ;;  %1148 = vmatpush.msrb.mxu3 %v790_v29 }
 0x11d   : > { %1171 = vmatpush.msrb.mxu0 %v830_v36  ;;  %1197 = vmatpush.msra.mxu1 %v831_v33 }
 0x11e   : > { %1792 = vmatmul.msk.f32.vlgmr.msrb.gmra.mxu2 %vm849_vm3, %v2285_v27  ;;  %1796 = vmatmul.msk.f32.vlgmr.msrb.gmra.mxu3 %vm849_vm3, %v2285_v27 }
 0x11f   : > { %1172 = vmatpush.msrb.mxu0 %v817_v43  ;;  %1198 = vmatpush.msra.mxu1 %v818_v31  ;;  %v769_v45 = vpop.f32.mrf.mxu0 }
 0x120   : > { %v770_v56 = vadd.f32 %v769_v45, %v2254_v53 }
 0x121   : > { %1173 = vmatpush.msrb.mxu0 %v804_v32  ;;  %1199 = vmatpush.msra.mxu1 %v805_v44 }
 0x122   : > { %v806_v60 = vmax.f32 %v770_v56, 0.0 }
 0x123   : > { %1174 = vmatpush.msrb.mxu0 %v791_v48  ;;  %1200 = vmatpush.msra.mxu1 %v792_v38 }
 0x124   : > { %1800 = vmatmul.msk.f32.vlgmr.msrb.gmra.mxu0 %vm849_vm3, %v2285_v27  ;;  %1804 = vmatmul.msk.f32.vlgmr.msra.gmra.mxu1 %vm849_vm3, %v2285_v27 }
 0x126   : > { %1793 = vmatmul.msk.f32.gmra.mxu2 %vm849_vm3, %v2303_v40  ;;  %1797 = vmatmul.msk.f32.gmra.mxu3 %vm849_vm3, %v2303_v40 }
 0x127   : > { %v772_v39 = vpop.f32.mrf.mxu0 }
 0x128   : > { %v773_v54 = vadd.f32 %v772_v39, %v2247_v42 }
 0x12a   : > { %v819_v59 = vmax.f32 %v773_v54, 0.0 }
 0x12c   : > { %1801 = vmatmul.msk.f32.gmra.mxu0 %vm849_vm3, %v2303_v40  ;;  %1805 = vmatmul.msk.f32.gmra.mxu1 %vm849_vm3, %v2303_v40 }
 0x12e   : > { %1794 = vmatmul.msk.f32.gmra.mxu2 %vm849_vm3, %v2314_v46  ;;  %1798 = vmatmul.msk.f32.gmra.mxu3 %vm849_vm3, %v2314_v46 }
 0x12f   : > { %v775_v49 = vpop.f32.mrf.mxu0 }
 0x130   : > { %v776_v51 = vadd.f32 %v775_v49, %v2251_v47 }
 0x132   : > { %v832_v57 = vmax.f32 %v776_v51, 0.0 }
 0x134   : > { %1802 = vmatmul.msk.f32.gmra.mxu0 %vm849_vm3, %v2314_v46  ;;  %1806 = vmatmul.msk.f32.gmra.mxu1 %vm849_vm3, %v2314_v46 }
 0x137   : > { %v778_v50 = vpop.f32.mrf.mxu0 }
 0x138   : > { %v779_v52 = vadd.f32 %v778_v50, %v2245_v41 }
 0x13a   : > { %v845_v55 = vmax.f32 %v779_v52, 0.0 }
 0x13c   : > { %1807 = vmatpush.msk.msra.mxu2 %vm859_vm2, %v845_v55 }
 0x13e   : > { %1223 = vmatpush.msra.mxu2 %v832_v57 }
 0x140   : > { %1224 = vmatpush.msra.mxu2 %v819_v59 }
 0x142   : > { %1225 = vmatpush.msra.mxu2 %v806_v60 }
 0x144   : > { %1226 = vmatpush.msra.mxu2 %v793_v61 }
 0x145   : > { %1808 = vmatmul.msk.f32.vlgmr.msra.gmra.mxu2 %vm849_vm3, %v2285_v27 }
 0x14a   : > { %v916_v41 = vpop.f32.mrf.mxu1 }
 0x14b   : > { %v1237_v2 = vmax.f32 %v916_v41, 0.0 }
 0x14d   : > { %1809 = vmatmul.msk.f32.gmra.mxu2 %vm849_vm3, %v2303_v40  ;;  %v2458_v40 = vld [vmem:[%s2579_s4] sm:$0x7f] }
 0x151   : > { %v942_v42 = vpop.f32.mrf.mxu2 }
 0x152   : > { %v919_v47 = vpop.f32.mrf.mxu1  ;;  %v1238_v6 = vmax.f32 %v942_v42, 0.0 }
 0x153   : > { %v1250_v0 = vmax.f32 %v919_v47, 0.0 }
 0x155   : > { %1810 = vmatmul.msk.f32.gmra.mxu2 %vm849_vm3, %v2314_v46 }
 0x157   : > { %v968_v53 = vpop.f32.mrf.mxu3 }
 0x158   : > { %v1239_v10 = vmax.f32 %v968_v53, 0.0 }
 0x159   : > { %v945_v63 = vpop.f32.mrf.mxu2 }
 0x15a   : > { %v922_v62 = vpop.f32.mrf.mxu1  ;;  %v1251_v4 = vmax.f32 %v945_v63, 0.0 }
 0x15b   : > { %v1263_v1 = vmax.f32 %v922_v62, 0.0 }
 0x15d   : > { %1811 = vmatpush.msk.msra.mxu3 %vm859_vm2, %v1263_v1 }
 0x15f   : > { %v971_v3 = vpop.f32.mrf.mxu3  ;;  %1334 = vmatpush.msra.mxu3 %v1250_v0 }
 0x160   : > { %v1252_v8 = vmax.f32 %v971_v3, 0.0 }
 0x161   : > { %v948_v27 = vpop.f32.mrf.mxu2  ;;  %1335 = vmatpush.msra.mxu3 %v1237_v2 }
 0x162   : > { %v1264_v5 = vmax.f32 %v948_v27, 0.0  ;;  %v994_v46 = vpop.f32.mrf.mxu1  ;;  %1812 = vmatmul.msk.f32.vlgmr.msra.gmra.mxu3 %vm1277_vm4, %v2458_v40 }
 0x163   : > { %v1240_v16 = vmax.f32 %v994_v46, 0.0 }
 0x164   : > { %1813 = vmatpush.msk.msrb.mxu3 %vm859_vm2, %v1264_v5 }
 0x166   : > { %1354 = vmatpush.msrb.mxu3 %v1251_v4 }
 0x167   : > { %v974_v7 = vpop.f32.mrf.mxu3 }
 0x168   : > { %1355 = vmatpush.msrb.mxu3 %v1238_v6  ;;  %v1265_v9 = vmax.f32 %v974_v7, 0.0 }
 0x16a   : > { %1815 = vmatpush.msk.msra.mxu0 %vm859_vm2, %v1265_v9  ;;  %1814 = vmatmul.msk.f32.vlgmr.msrb.gmra.mxu3 %vm1277_vm4, %v2458_v40  ;;  %v997_v11 = vpop.f32.mrf.mxu1 }
 0x16b   : > { %v1253_v13 = vmax.f32 %v997_v11, 0.0 }
 0x16c   : > { %1374 = vmatpush.msra.mxu0 %v1252_v8 }
 0x16e   : > { %1375 = vmatpush.msra.mxu0 %v1239_v10 }
 0x16f   : > { %1816 = vmatmul.msk.f32.vlgmr.msra.gmra.mxu0 %vm1277_vm4, %v2458_v40 }
 0x175   : > { %v1000_v12 = vpop.f32.mrf.mxu1 }
 0x176   : > { %v1266_v15 = vmax.f32 %v1000_v12, 0.0 }
 0x178   : > { %1817 = vmatpush.msk.msra.mxu3 %vm859_vm2, %v1266_v15 }
 0x179   : > { %v1020_v17 = vpop.f32.mrf.mxu2  ;;  %v1072_v14 = vpop.f32.mrf.mxu0 }
 0x17a   : > { %1394 = vmatpush.msra.mxu3 %v1253_v13  ;;  %v1046_v20 = vpop.f32.mrf.mxu3  ;;  %v1241_v37 = vmax.f32 %v1020_v17, 0.0  ;;  %v1243_v34 = vmax.f32 %v1072_v14, 0.0 }
 0x17b   : > { %v1242_v43 = vmax.f32 %v1046_v20, 0.0 }
 0x17c   : > { %1395 = vmatpush.msra.mxu3 %v1240_v16 }
 0x17d   : > { %v1098_v21 = vpop.f32.mrf.mxu1  ;;  %1818 = vmatmul.msk.f32.vlgmr.msra.gmra.mxu3 %vm1277_vm4, %v2458_v40 }
 0x17e   : > { %v1244_v45 = vmax.f32 %v1098_v21, 0.0 }
 0x181   : > { %v1023_v22 = vpop.f32.mrf.mxu2  ;;  %v1075_v23 = vpop.f32.mrf.mxu0 }
 0x182   : > { %v1049_v18 = vpop.f32.mrf.mxu3  ;;  %v1254_v26 = vmax.f32 %v1023_v22, 0.0  ;;  %v1256_v29 = vmax.f32 %v1075_v23, 0.0 }
 0x183   : > { %v1255_v36 = vmax.f32 %v1049_v18, 0.0 }
 0x185   : > { %v1101_v19 = vpop.f32.mrf.mxu1 }
 0x186   : > { %v1257_v32 = vmax.f32 %v1101_v19, 0.0 }
 0x189   : > { %v1026_v24 = vpop.f32.mrf.mxu2  ;;  %v1078_v25 = vpop.f32.mrf.mxu0 }
 0x18a   : > { %v1267_v28 = vmax.f32 %v1026_v24, 0.0  ;;  %v1269_v30 = vmax.f32 %v1078_v25, 0.0  ;;  %v1052_v35 = vpop.f32.mrf.mxu3 }
 0x18b   : > { %v1268_v33 = vmax.f32 %v1052_v35, 0.0 }
 0x18c   : > { %1819 = vmatpush.msk.msrb.mxu0 %vm859_vm2, %v1267_v28  ;;  %1823 = vmatpush.msk.msrb.mxu2 %vm859_vm2, %v1269_v30 }
 0x18d   : > { %v1104_v31 = vpop.f32.mrf.mxu1  ;;  %1821 = vmatpush.msk.msrb.mxu1 %vm859_vm2, %v1268_v33 }
 0x18e   : > { %1414 = vmatpush.msrb.mxu0 %v1254_v26  ;;  %v1270_v44 = vmax.f32 %v1104_v31, 0.0  ;;  %1454 = vmatpush.msrb.mxu2 %v1256_v29 }
 0x18f   : > { %1434 = vmatpush.msrb.mxu1 %v1255_v36 }
 0x190   : > { %1415 = vmatpush.msrb.mxu0 %v1241_v37  ;;  %1825 = vmatpush.msk.msrb.mxu3 %vm859_vm2, %v1270_v44 }
 0x191   : > { %1455 = vmatpush.msrb.mxu2 %v1243_v34  ;;  %1435 = vmatpush.msrb.mxu1 %v1242_v43 }
 0x192   : > { %1474 = vmatpush.msrb.mxu3 %v1257_v32  ;;  %1820 = vmatmul.msk.f32.vlgmr.msrb.gmra.mxu0 %vm1277_vm4, %v2458_v40 }
 0x193   : > { %1824 = vmatmul.msk.f32.vlgmr.msrb.gmra.mxu2 %vm1277_vm4, %v2458_v40  ;;  %1822 = vmatmul.msk.f32.vlgmr.msrb.gmra.mxu1 %vm1277_vm4, %v2458_v40 }
 0x194   : > { %1475 = vmatpush.msrb.mxu3 %v1244_v45 }
 0x195   : > { %1826 = vmatmul.msk.f32.vlgmr.msrb.gmra.mxu3 %vm1277_vm4, %v2458_v40 }
 0x1a1   : > { %v1124_v48 = vpop.f32.mrf.mxu2  ;;  %v1176_v38 = vpop.f32.mrf.mxu0 }
 0x1a2   : > { %v1202_v39 = vpop.f32.mrf.mxu1  ;;  %v1150_v49 = vpop.f32.mrf.mxu3  ;;  %v1247_v62 = vmax.f32 %v1176_v38, 0.0  ;;  %v1245_v2 = vmax.f32 %v1124_v48, 0.0 }
 0x1a3   : > { %v1248_v0 = vmax.f32 %v1202_v39, 0.0  ;;  %v1246_v1 = vmax.f32 %v1150_v49, 0.0 }
 0x1a9   : > { %v1127_v50 = vpop.f32.mrf.mxu2  ;;  %v1179_v51 = vpop.f32.mrf.mxu0 }
 0x1aa   : > { %v1205_v52 = vpop.f32.mrf.mxu1  ;;  %v1153_v54 = vpop.f32.mrf.mxu3  ;;  %v1258_v57 = vmax.f32 %v1127_v50, 0.0  ;;  %v1260_v59 = vmax.f32 %v1179_v51, 0.0 }
 0x1ab   : > { %v1261_v42 = vmax.f32 %v1205_v52, 0.0  ;;  %v1259_v47 = vmax.f32 %v1153_v54, 0.0 }
 0x1b1   : > { %v1130_v55 = vpop.f32.mrf.mxu2  ;;  %v1182_v56 = vpop.f32.mrf.mxu0 }
 0x1b2   : > { %v1271_v58 = vmax.f32 %v1130_v55, 0.0  ;;  %v1273_v60 = vmax.f32 %v1182_v56, 0.0  ;;  %v1208_v61 = vpop.f32.mrf.mxu1  ;;  %v1156_v41 = vpop.f32.mrf.mxu3 }
 0x1b3   : > { %v1274_v53 = vmax.f32 %v1208_v61, 0.0  ;;  %v1272_v63 = vmax.f32 %v1156_v41, 0.0 }
 0x1b4   : > { %1827 = vmatpush.msk.msra.mxu0 %vm859_vm2, %v1271_v58  ;;  %1831 = vmatpush.msk.msra.mxu2 %vm859_vm2, %v1273_v60 }
 0x1b5   : > { %1833 = vmatpush.msk.msra.mxu3 %vm859_vm2, %v1274_v53  ;;  %1829 = vmatpush.msk.msra.mxu1 %vm859_vm2, %v1272_v63 }
 0x1b6   : > { %1494 = vmatpush.msra.mxu0 %v1258_v57  ;;  %1534 = vmatpush.msra.mxu2 %v1260_v59 }
 0x1b7   : > { %1554 = vmatpush.msra.mxu3 %v1261_v42  ;;  %1514 = vmatpush.msra.mxu1 %v1259_v47 }
 0x1b8   : > { %1495 = vmatpush.msra.mxu0 %v1245_v2  ;;  %1535 = vmatpush.msra.mxu2 %v1247_v62 }
 0x1b9   : > { %1555 = vmatpush.msra.mxu3 %v1248_v0  ;;  %1515 = vmatpush.msra.mxu1 %v1246_v1 }
 0x1ba   : > { %1828 = vmatmul.msk.f32.vlgmr.msra.gmra.mxu0 %vm1277_vm4, %v2458_v40  ;;  %1832 = vmatmul.msk.f32.vlgmr.msra.gmra.mxu2 %vm1277_vm4, %v2458_v40 }
 0x1bb   : > { %1834 = vmatmul.msk.f32.vlgmr.msra.gmra.mxu3 %vm1277_vm4, %v2458_v40  ;;  %1830 = vmatmul.msk.f32.vlgmr.msra.gmra.mxu1 %vm1277_vm4, %v2458_v40 }
 0x1c8   : > { %v1228_v3 = vpop.f32.mrf.mxu2 }
 0x1c9   : > { %v1249_v6 = vmax.f32 %v1228_v3, 0.0 }
 0x1d0   : > { %v1231_v27 = vpop.f32.mrf.mxu2 }
 0x1d1   : > { %v1262_v46 = vmax.f32 %v1231_v27, 0.0 }
 0x1d8   : > { %v1234_v4 = vpop.f32.mrf.mxu2 }
 0x1d9   : > { %v1275_v5 = vmax.f32 %v1234_v4, 0.0 }
 0x1db   : > { %1835 = vmatpush.msk.msrb.mxu0 %vm859_vm2, %v1275_v5 }
 0x1dd   : > { %1574 = vmatpush.msrb.mxu0 %v1262_v46 }
 0x1df   : > { %1575 = vmatpush.msrb.mxu0 %v1249_v6 }
 0x1e0   : > { %1836 = vmatmul.msk.f32.vlgmr.msrb.gmra.mxu0 %vm1277_vm4, %v2458_v40 }
 0x1e5   : > { %v1337_v7 = vpop.f32.mrf.mxu3 }
 0x1e6   : > { %1580 = vst [vmem:[%s2501_s11] sm:$0x7f] %v1337_v7 }
 0x1ec   : > { %v1377_v8 = vpop.f32.mrf.mxu0 }
 0x1ed   : > { %1582 = vst [vmem:[%s2501_s11 + $0x10] sm:$0x7f] %v1377_v8  ;;  %v1357_v9 = vpop.f32.mrf.mxu3 }
 0x1ee   : > { %1581 = vst [vmem:[%s2501_s11 + $0x8] sm:$0x7f] %v1357_v9 }
 0x200   : > { %v1397_v40 = vpop.f32.mrf.mxu3 }
 0x201   : > { %1583 = vst [vmem:[%s2501_s11 + $0x18] sm:$0x7f] %v1397_v40 }
 0x20f   : > { %v1417_v10 = vpop.f32.mrf.mxu0 }
 0x210   : > { %1584 = vst [vmem:[%s2501_s11 + $0x20] sm:$0x7f] %v1417_v10  ;;  %v1437_v11 = vpop.f32.mrf.mxu1 }
 0x211   : > { %1585 = vst [vmem:[%s2501_s11 + $0x28] sm:$0x7f] %v1437_v11 }
 0x216   : > { %v1457_v12 = vpop.f32.mrf.mxu2 }
 0x217   : > { %1586 = vst [vmem:[%s2501_s11 + $0x30] sm:$0x7f] %v1457_v12 }
 0x218   : > { %v1477_v13 = vpop.f32.mrf.mxu3 }
 0x219   : > { %1587 = vst [vmem:[%s2501_s11 + $0x38] sm:$0x7f] %v1477_v13 }
 0x237   : > { %v1497_v15 = vpop.f32.mrf.mxu0 }
 0x238   : > { %1588 = vst [vmem:[%s2501_s11 + $0x40] sm:$0x7f] %v1497_v15  ;;  %v1517_v16 = vpop.f32.mrf.mxu1 }
 0x239   : > { %1589 = vst [vmem:[%s2501_s11 + $0x48] sm:$0x7f] %v1517_v16 }
 0x23d   : > { %v1537_v17 = vpop.f32.mrf.mxu2 }
 0x23e   : > { %1590 = vst [vmem:[%s2501_s11 + $0x50] sm:$0x7f] %v1537_v17  ;;  %v1557_v14 = vpop.f32.mrf.mxu3 }
 0x23f   : > { %1591 = vst [vmem:[%s2501_s11 + $0x58] sm:$0x7f] %v1557_v14 }
 0x25a   : > { %1600 = sbr.rel (!%p2033_p5) target bundleno = 637 (0x27d), region = 44 }
 0x25d   : > { %v1577_v20 = vpop.f32.mrf.mxu0 }
 0x25e   : > { %1592 = vst [vmem:[%s2501_s11 + $0x60] sm:$0x7f] %v1577_v20 }
 0x25f   : > { %s2589_s13 = smov (!%p1603_p11, %s1602_s13), 13 }
 0x260   : > { %s1837_s14 = sshll.u32 %s2589_s13, 3 }
 0x261   : > { %s1606_s15 = ssub.s32 104, %s1837_s14 }
 0x262   : > { %s1607_s16 = sshll.u32 %s1606_s15, 4 }
 0x263   : > { %1608 = vsyncadd %s2518_s12, %s1607_s16  ;;  %p2527_p12 = scmp.ne.s32.totalorder %s1837_s14, 0  ;;  %s1844_s28 = smul.u32 104, %s2016_s22 }
 0x264   : > { %s1841_s23 = sshll.u32 %s2589_s13, 7  ;;  %s1614_s30 = sshll.u32 %s2501_s11, 4  ;;  %s2537_s30 = int_to_ptr.vmem [resolvable:$true] %s1614_s30 }
 0x265   : > { %s1611_s6 = scalar_lea.hbm %s2580_s5, %s1844_s28  ;;  %s1888_s8 = sshra.s32 %s2537_s30, 4  ;;  %s1889_s8 = int_to_ptr.vmem [resolvable:$true] %s1888_s8 }
 0x266   : > { %s1616_s7 = sshll.u32 %s1611_s6, 4  ;;  %s1890_s9 = sshrl.u32 %s1841_s23, 4  ;;  %s1617_s7 = int_to_ptr.hbm [resolvable:$true] %s1616_s7 }
 0x267   : > { %s1895_s10 = scalar_lea.vmem %s1889_s8, %s1890_s9  ;;  %s1964_s22 = smov [#allocation2]  }
 0x268   : > { %p1896_p13 = scmp.ne.s32.totalorder %s1889_s8, %s1895_s10  ;;  %s1899_s11 = scalar_lea.vmem %s1964_s22, 208 }
 0x269   : > { %p1901_p2 = scmp.lt.s32.totalorder %s1899_s11, %s1895_s10 }
 0x26a   : > { %p1897_p0 = pnand %p1896_p13, %p2527_p12 }
 0x26c   : > { %p1898_p1 = pneg %p1897_p0 }
 0x26e   : > { %p1903_p3 = pnand %p1901_p2, %p1898_p1 }
 0x270   : > { %1906 = shalt.err (!%p1903_p3)
}
 0x271   : > { %s1907_s14 = sshra.s32 %s1617_s7, 4  ;;  %s1918_s25 = scalar_lea.hbm %s2580_s5, 320  ;;  %s1908_s14 = int_to_ptr.hbm [resolvable:$true] %s1907_s14 }
 0x272   : > { %s1914_s15 = scalar_lea.hbm %s1908_s14, %s1890_s9  ;;  %p1919_p8 = scmp.lt.s32.totalorder %s1908_s14, %s2580_s5 }
 0x273   : > { %p1915_p4 = scmp.ne.s32.totalorder %s1908_s14, %s1914_s15  ;;  %p1920_p9 = scmp.lt.s32.totalorder %s1918_s25, %s1914_s15 }
 0x275   : > { %p1916_p5 = pnand %p1915_p4, %p2527_p12  ;;  %p1921_p10 = por %p1920_p9, %p1919_p8 }
 0x277   : > { %p1917_p7 = pneg %p1916_p5 }
 0x279   : > { %p1922_p11 = pnand %p1921_p10, %p1917_p7 }
 0x27b   : > { %1925 = shalt.err (!%p1922_p11)
}
 0x27c   : > { %1619 = dma.vmem_to_hbm [thread:$0]  (%p2527_p12), %s2537_s30, %s1841_s23, %s1617_s7, %s2518_s12  }
 0x27d PF: > { %p1851_p13 = scmp.ge.s32.totalorder %s1961_s21, 2  ;;  %s1628_s8 = sand.u32 1, %s1949_s18  }
 0x27e   : > { %s1629_s9 = scalar_lea.sflag [#allocation3], %s1628_s8 }
 0x27f   : > { %p1848_p0 = pnand %p1851_p13, %p2037_p6 }
 0x281   : > { %p1849_p1 = pneg %p1848_p0 }
 0x283   : > { %1944 = dma.done.wait (%p1849_p1), %s1629_s9, 1664  }
 0x284   : > { %1946 = vsyncadd (%p1849_p1), %s1629_s9, 4294965632  ;;  %p15_p2 = scmp.ge.s32.totalorder %s2020_s24, 6   ;;  %s2584_s18 = smov %s1953_s19 }
 0x285   : > { %s2585_s19 = smov %s1957_s20  ;;  %s2586_s20 = smov %s2031_s27 }
 0x286   : > { %s2587_s21 = smov %s2020_s24  ;;  %17 = sbr.rel (!%p15_p2) target bundleno = 3 (0x3), region = 78 }
 0x28b   :  { %1635 = vsyncpa [#allocation3], 1 }
 0x28c   :  { %1637 = vsyncpa [#allocation3 + $0x1], 1 }

</bundles_post_ra>
